<compile_context>
chip_gen: v7x
topology: tpu7x:2x2x1
jax: 0.10.0
libtpu: 0.0.40
codegen_flags: <defaults>
</compile_context>

<pallas_src>
import numpy as np

import jax
import jax.numpy as jnp
from jax import lax
from jax.experimental import pallas as pl
from jax.experimental.pallas import tpu as pltpu


# Contract the last dim of both operands: A[M,K] x B[N,K] -> [M,N]  (A @ B.T
# without materializing B.T — same pattern as the flash-attention kernels).
_TRANS_B_DIMS = (((1,), (1,)), ((), ()))


def _contrastive_loss_kernel(tau: float):
    """Returns a kernel closure with the temperature baked in as constants."""
    inv_tau = 1.0 / float(tau)
    half_tau = 0.5 * float(tau)

    def kernel(x_ref, y_ref, out_ref):
        x = x_ref[...]                     # [B, D], native dtype -> MXU
        y = y_ref[...]                     # [B, D]
        b = x.shape[0]

        # logits = (X @ Y.T) * (1/tau)                               [B, B] (MXU)
        logits = lax.dot_general(
            x, y, _TRANS_B_DIMS, preferred_element_type=jnp.float32) * inv_tau

        # sim = Y @ Y.T + X @ X.T, accumulated in a single BxB f32 buffer (MXU)
        sim = lax.dot_general(y, y, _TRANS_B_DIMS, preferred_element_type=jnp.float32)
        sim = sim + lax.dot_general(x, x, _TRANS_B_DIMS, preferred_element_type=jnp.float32)
        t_in = sim * half_tau              # (X_sim + Y_sim)/2 * tau

        # Unnormalized row-softmax targets; normalization deferred to a [B,1]
        # divide (no BxB divide, no explicit `targets` matrix).
        t_max = jnp.max(t_in, axis=-1, keepdims=True)            # [B, 1]
        t_exp = jnp.exp(t_in - t_max)                             # [B, B]
        t_sum = jnp.sum(t_exp, axis=-1, keepdims=True)            # [B, 1]

        # Row-wise and column-wise log-sum-exp of logits.
        # col_lse replaces log_softmax(logits.T): no transpose is materialized.
        row_max = jnp.max(logits, axis=-1, keepdims=True)         # [B, 1]
        row_lse = row_max + jnp.log(
            jnp.sum(jnp.exp(logits - row_max), axis=-1, keepdims=True))
        col_max = jnp.max(logits, axis=0, keepdims=True)          # [1, B]
        col_lse = col_max + jnp.log(
            jnp.sum(jnp.exp(logits - col_max), axis=0, keepdims=True))

        # loss = mean_i (x_loss_i + y_loss_i) / 2
        #      = 1/(2B) * sum_{i,j} targets[i,j] *
        #                 (row_lse[i] + col_lse[j] - 2 * logits[i,j])
        weighted = t_exp * (row_lse + col_lse - 2.0 * logits)      # [B, B] fused pass
        per_row = jnp.sum(weighted, axis=-1, keepdims=True) / t_sum  # [B, 1]

        out_ref[...] = jnp.sum(per_row, axis=0, keepdims=True) * (0.5 / b)  # (1,1)

    return kernel


def contrastive_loss2(X, Y, tau: float = 1.0):
    """Pallas implementation of Contrastive_Loss2.forward(X, Y) -> scalar."""
    B, D = X.shape
    assert Y.shape == (B, D), (X.shape, Y.shape)

    # Rough VMEM budget: ~6 live BxB f32 buffers + both [B,D] inputs + headroom.
    itemsize = jnp.dtype(X.dtype).itemsize
    est = 6 * B * B * 4 + 4 * B * D * itemsize + (1 << 20)
    vmem_limit = int(min(100 * 2**20, max(16 * 2**20, est)))

    out = pl.pallas_call(
        _contrastive_loss_kernel(float(tau)),
        out_shape=jax.ShapeDtypeStruct((1, 1), jnp.float32),
        in_specs=[
            pl.BlockSpec((B, D), lambda: (0, 0), memory_space=pltpu.VMEM),
            pl.BlockSpec((B, D), lambda: (0, 0), memory_space=pltpu.VMEM),
        ],
        out_specs=pl.BlockSpec((1, 1), lambda: (0, 0), memory_space=pltpu.VMEM),
        compiler_params=pltpu.CompilerParams(vmem_limit_bytes=vmem_limit),
    )(X, Y)
    return out[0, 0]


def _reference_loss_np(X, Y, tau: float = 1.0):
    """float64 numpy reference mirroring the PyTorch module (ground truth)."""
    X = np.asarray(X, dtype=np.float64)
    Y = np.asarray(Y, dtype=np.float64)
    logits = X @ Y.T / tau
    x_sim = Y @ Y.T
    y_sim = X @ X.T
    t = (x_sim + y_sim) / 2.0 * tau
    t = t - t.max(axis=-1, keepdims=True)
    targets = np.exp(t)
    targets = targets / targets.sum(axis=-1, keepdims=True)

    def log_softmax(z):
        z = z - z.max(axis=-1, keepdims=True)
        return z - np.log(np.exp(z).sum(axis=-1, keepdims=True))

    x_loss = (-targets * log_softmax(logits)).sum(axis=1)
    y_loss = (-targets.T * log_softmax(logits.T)).sum(axis=1)
    return ((x_loss + y_loss) / 2.0).mean()


if __name__ == "__main__":
    key = jax.random.PRNGKey(0)
    kx, ky = jax.random.split(key)
    B, D = 8, 32  # small [batch, feature] shapes consistent with the module
    X = jax.random.normal(kx, (B, D), dtype=jnp.float32)
    Y = jax.random.normal(ky, (B, D), dtype=jnp.float32)

    loss = jax.block_until_ready(contrastive_loss2(X, Y, tau=1.0))
    ref = _reference_loss_np(np.asarray(X), np.asarray(Y), tau=1.0)

    # Tolerance covers MXU rounding on the three similarity matmuls.
    assert np.allclose(float(loss), float(ref), atol=1e-2, rtol=1e-2), (loss, ref)

    print("KERNEL_OK")
</pallas_src>

<mosaic_0001>
module attributes {stable_mosaic.version = 11 : i64} {
  func.func @kernel(%arg0: memref<8x32xf32, #tpu.memory_space<vmem>>, %arg1: memref<8x32xf32, #tpu.memory_space<vmem>>, %arg2: memref<1x1xf32, #tpu.memory_space<vmem>>) attributes {dimension_semantics = [], scalar_prefetch = 0 : i64, scratch_operands = 0 : i64, tpu.core_type = #tpu.core_type<tc>} {
    %c0 = arith.constant 0 : index
    %c0_0 = arith.constant 0 : index
    %0 = vector.load %arg0[%c0, %c0_0] : memref<8x32xf32, #tpu.memory_space<vmem>>, vector<8x32xf32>
    %c0_1 = arith.constant 0 : index
    %c0_2 = arith.constant 0 : index
    %1 = vector.load %arg1[%c0_1, %c0_2] : memref<8x32xf32, #tpu.memory_space<vmem>>, vector<8x32xf32>
    %cst = arith.constant dense<0.000000e+00> : vector<8x8xf32>
    %2 = tpu.matmul %0, %1, %cst {dimension_numbers = #tpu.dot_dimension_numbers<[1], [1], [0], [0], [0, 0, 1, 0], [], []>} : vector<8x32xf32>, vector<8x32xf32>, vector<8x8xf32> -> vector<8x8xf32>
    %cst_3 = arith.constant 1.000000e+00 : f32
    %3 = vector.broadcast %cst_3 : f32 to vector<8x8xf32>
    %4 = arith.mulf %2, %3 : vector<8x8xf32>
    %cst_4 = arith.constant dense<0.000000e+00> : vector<8x8xf32>
    %5 = tpu.matmul %1, %1, %cst_4 {dimension_numbers = #tpu.dot_dimension_numbers<[1], [1], [0], [0], [0, 0, 1, 0], [], []>} : vector<8x32xf32>, vector<8x32xf32>, vector<8x8xf32> -> vector<8x8xf32>
    %cst_5 = arith.constant dense<0.000000e+00> : vector<8x8xf32>
    %6 = tpu.matmul %0, %0, %cst_5 {dimension_numbers = #tpu.dot_dimension_numbers<[1], [1], [0], [0], [0, 0, 1, 0], [], []>} : vector<8x32xf32>, vector<8x32xf32>, vector<8x8xf32> -> vector<8x8xf32>
    %7 = arith.addf %5, %6 : vector<8x8xf32>
    %cst_6 = arith.constant 5.000000e-01 : f32
    %8 = vector.broadcast %cst_6 : f32 to vector<8x8xf32>
    %9 = arith.mulf %7, %8 : vector<8x8xf32>
    %cst_7 = arith.constant dense<0xFF800000> : vector<8xf32>
    %10 = vector.multi_reduction <maximumf>, %9, %cst_7 [1] : vector<8x8xf32> to vector<8xf32>
    %11 = vector.shape_cast %10 : vector<8xf32> to vector<8x1xf32>
    %12 = vector.broadcast %11 : vector<8x1xf32> to vector<8x8xf32>
    %13 = arith.subf %9, %12 : vector<8x8xf32>
    %14 = math.exp %13 : vector<8x8xf32>
    %cst_8 = arith.constant dense<0.000000e+00> : vector<8xf32>
    %15 = vector.multi_reduction <add>, %14, %cst_8 [1] : vector<8x8xf32> to vector<8xf32>
    %16 = vector.shape_cast %15 : vector<8xf32> to vector<8x1xf32>
    %cst_9 = arith.constant dense<0xFF800000> : vector<8xf32>
    %17 = vector.multi_reduction <maximumf>, %4, %cst_9 [1] : vector<8x8xf32> to vector<8xf32>
    %18 = vector.shape_cast %17 : vector<8xf32> to vector<8x1xf32>
    %19 = vector.broadcast %18 : vector<8x1xf32> to vector<8x8xf32>
    %20 = arith.subf %4, %19 : vector<8x8xf32>
    %21 = math.exp %20 : vector<8x8xf32>
    %cst_10 = arith.constant dense<0.000000e+00> : vector<8xf32>
    %22 = vector.multi_reduction <add>, %21, %cst_10 [1] : vector<8x8xf32> to vector<8xf32>
    %23 = vector.shape_cast %22 : vector<8xf32> to vector<8x1xf32>
    %24 = math.log %23 : vector<8x1xf32>
    %25 = arith.addf %18, %24 : vector<8x1xf32>
    %cst_11 = arith.constant dense<0xFF800000> : vector<8xf32>
    %26 = vector.multi_reduction <maximumf>, %4, %cst_11 [0] : vector<8x8xf32> to vector<8xf32>
    %27 = vector.shape_cast %26 : vector<8xf32> to vector<1x8xf32>
    %28 = vector.broadcast %27 : vector<1x8xf32> to vector<8x8xf32>
    %29 = arith.subf %4, %28 : vector<8x8xf32>
    %30 = math.exp %29 : vector<8x8xf32>
    %cst_12 = arith.constant dense<0.000000e+00> : vector<8xf32>
    %31 = vector.multi_reduction <add>, %30, %cst_12 [0] : vector<8x8xf32> to vector<8xf32>
    %32 = vector.shape_cast %31 : vector<8xf32> to vector<1x8xf32>
    %33 = math.log %32 : vector<1x8xf32>
    %34 = arith.addf %27, %33 : vector<1x8xf32>
    %35 = vector.broadcast %25 : vector<8x1xf32> to vector<8x8xf32>
    %36 = vector.broadcast %34 : vector<1x8xf32> to vector<8x8xf32>
    %37 = arith.addf %35, %36 : vector<8x8xf32>
    %cst_13 = arith.constant 2.000000e+00 : f32
    %38 = vector.broadcast %cst_13 : f32 to vector<8x8xf32>
    %39 = arith.mulf %38, %4 : vector<8x8xf32>
    %40 = arith.subf %37, %39 : vector<8x8xf32>
    %41 = arith.mulf %14, %40 : vector<8x8xf32>
    %cst_14 = arith.constant dense<0.000000e+00> : vector<8xf32>
    %42 = vector.multi_reduction <add>, %41, %cst_14 [1] : vector<8x8xf32> to vector<8xf32>
    %43 = vector.shape_cast %42 : vector<8xf32> to vector<8x1xf32>
    %44 = arith.divf %43, %16 : vector<8x1xf32>
    %cst_15 = arith.constant dense<0.000000e+00> : vector<1xf32>
    %45 = vector.multi_reduction <add>, %44, %cst_15 [0] : vector<8x1xf32> to vector<1xf32>
    %46 = vector.shape_cast %45 : vector<1xf32> to vector<1x1xf32>
    %cst_16 = arith.constant 6.250000e-02 : f32
    %47 = vector.broadcast %cst_16 : f32 to vector<1x1xf32>
    %48 = arith.mulf %46, %47 : vector<1x1xf32>
    %c0_17 = arith.constant 0 : index
    %c0_18 = arith.constant 0 : index
    %49 = vector.load %arg2[%c0_17, %c0_18] : memref<1x1xf32, #tpu.memory_space<vmem>>, vector<1x1xf32>
    tpu.vector_store %arg2[%c0_17, %c0_18], %48 {strides = array<i32>} : memref<1x1xf32, #tpu.memory_space<vmem>>, vector<1x1xf32>,
    return
  }
}

</mosaic_0001>

<bundles_post_ra>
// kernel: tpu_custom_call.1
= control target key start
LH: loop header
LB: loop body
LE: loop exit
PB: predicated region body
PF: predicated region fallthrough
CT: control target
= control target key end

     0   :  { %7 = vsyncpa [#allocation3], 0  ;;  %s511_s0 = inlined_call_operand.hbm [shape: f32[8,32], index: 0, kind: input, shape index: {}]   ;;  %s512_s1 = inlined_call_operand.hbm [shape: f32[8,32], index: 1, kind: input, shape index: {}]   ;;  %s513_s2 = inlined_call_operand.hbm [shape: f32[1,1], index: 2, kind: output, shape index: {}]  }
   0x1   :  { %8 = vsyncpa [#allocation6], 0 }
   0x2   :  { %9 = vsyncpa [#allocation4], 0  ;;  %s449_s9 = smov [#allocation2]   ;;  %s450_s11 = smov [#allocation5]  }
   0x3   :  { %s16_s10 = sshll.u32 %s449_s9, 4  ;;  %s26_s12 = sshll.u32 %s450_s11, 4  ;;  %s17_s10 = int_to_ptr.vmem [resolvable:$true] %s16_s10  ;;  %s27_s12 = int_to_ptr.vmem [resolvable:$true] %s26_s12 }
   0x4   :  { %s377_s15 = scalar_lea.hbm %s511_s0, 128 }
   0x5   :  { %p378_p0 = scmp.ne.s32.totalorder %s511_s0, %s377_s15  ;;  %p381_p1 = scmp.lt.u32.totalorder %s377_s15, %s511_s0 }
   0x7   :  { %p383_p2 = pnand %p381_p1, %p378_p0 }
   0x9   :  { %386 = shalt.err (!%p383_p2)
}
   0xa   :  { %s387_s20 = scalar_lea.vmem %s17_s10, 128  ;;  %p392_p4 = scmp.lt.s32.totalorder %s17_s10, %s17_s10 }
   0xb   :  { %p388_p3 = scmp.ne.s32.totalorder %s17_s10, %s387_s20  ;;  %p393_p5 = scmp.lt.s32.totalorder %s387_s20, %s387_s20 }
   0xd   :  { %p394_p6 = por %p393_p5, %p392_p4 }
   0xf   :  { %p395_p7 = pnand %p394_p6, %p388_p3 }
  0x11   :  { %398 = shalt.err (!%p395_p7)
}
  0x12   :  { %19 = dma.hbm_to_vmem [thread:$0]  %s511_s0, 128, %s17_s10, [#allocation3]  }
  0x13   :  { %s399_s25 = scalar_lea.hbm %s512_s1, 128 }
  0x14   :  { %p400_p8 = scmp.ne.s32.totalorder %s512_s1, %s399_s25  ;;  %p403_p9 = scmp.lt.u32.totalorder %s399_s25, %s512_s1 }
  0x16   :  { %p405_p10 = pnand %p403_p9, %p400_p8 }
  0x18   :  { %408 = shalt.err (!%p405_p10)
}
  0x19   :  { %s409_s30 = scalar_lea.vmem %s27_s12, 128  ;;  %p414_p12 = scmp.lt.s32.totalorder %s27_s12, %s27_s12 }
  0x1a   :  { %p410_p11 = scmp.ne.s32.totalorder %s27_s12, %s409_s30  ;;  %p415_p13 = scmp.lt.s32.totalorder %s409_s30, %s409_s30 }
  0x1c   :  { %p416_p0 = por %p415_p13, %p414_p12 }
  0x1e   :  { %p417_p1 = pnand %p416_p0, %p410_p11 }
  0x20   :  { %420 = shalt.err (!%p417_p1)
}
  0x21   :  { %29 = dma.hbm_to_vmem [thread:$0]  %s512_s1, 128, %s27_s12, [#allocation6]  }
  0x22   :  { %443 = dma.done.wait [#allocation3], 128  }
  0x23   :  { %444 = vsyncadd [#allocation3], 4294967168 }
  0x24   :  { %445 = dma.done.wait [#allocation6], 128  }
  0x25   :  { %446 = vsyncadd [#allocation6], 4294967168  ;;  %v451_v0 = vmov 0.0   ;;  %vm452_vm0 = vmmov 0   ;;  %vm38_vm1 = vcmask 261120   ;;  %v37_v1 = vld [vmem:[#allocation5] sm:$0xff] }
  0x26   :  { %343 = vmatprep.subr.mxu0 %v451_v0  ;;  %348 = vmatprep.subr.mxu1 %v451_v0  ;;  %v36_v2 = vld [vmem:[#allocation2] sm:$0xff]  ;;  %vm256_vm2 = vcmask 64512   ;;  %s453_s1 = smov [#allocation7]   ;;  %vm313_vm3 = vcmask 0  }
  0x27   :  { %345 = vmatprep.mubr.msk.f32.mxu0 %vm452_vm0, %v451_v0  ;;  %350 = vmatprep.mubr.msk.f32.mxu1 %vm452_vm0, %v451_v0  ;;  %s321_s4 = sshll.u32 %s453_s1, 4  ;;  %s322_s4 = int_to_ptr.vmem [resolvable:$true] %s321_s4 }
  0x28   :  { %344 = vmatpush3.xpose.msk.msra.mxu0 %vm38_vm1, %v37_v1  ;;  %349 = vmatpush3.xpose.msk.msra.mxu1 %vm38_vm1, %v36_v2  ;;  %s421_s5 = scalar_lea.vmem %s322_s4, 16  ;;  %s425_s6 = scalar_lea.vmem %s322_s4, 32 }
  0x29   :  { %353 = vmatprep.subr.mxu1 %v451_v0  ;;  %p422_p2 = scmp.ne.s32.totalorder %s322_s4, %s421_s5  ;;  %p426_p3 = scmp.lt.s32.totalorder %s322_s4, %s322_s4 }
  0x2a   :  { %p427_p4 = scmp.lt.s32.totalorder %s425_s6, %s421_s5 }
  0x2b   :  { %346 = vmatmul.mubr.msk.f32.vlgmr.msra.gmra.mrb[0].mxu0 %vm38_vm1, %v36_v2  ;;  %351 = vmatmul.mubr.msk.f32.vlgmr.msra.gmra.mrb[0].mxu1 %vm38_vm1, %v36_v2 }
  0x2c   :  { %354 = vmatpush3.xpose.msk.msra.mxu1 %vm38_vm1, %v37_v1  ;;  %355 = vmatprep.mubr.msk.f32.mxu1 %vm452_vm0, %v451_v0  ;;  %p428_p5 = por %p427_p4, %p426_p3 }
  0x2e   :  { %p429_p6 = pnand %p428_p5, %p422_p2 }
  0x33   :  { %356 = vmatmul.mubr.msk.f32.vlgmr.msra.gmra.mrb[0].mxu1 %vm38_vm1, %v37_v1 }
  0xfe   :  { %v111_v3 = vpop.f32.mrb[0].mxu0 }
  0xff   :  { %v347_v4 = vpop.f32.mrb[1].mxu0  ;;  %v266_v5 = vsel %vm256_vm2, %v111_v3, -inf  ;;  %v298_v43 = vmul.f32 2.0, %v111_v3 }
 0x100   :  { %267 = vmax.xlane.f32.xlu0 %v266_v5  ;;  %v278_v6 = vrot.slane %v266_v5, 4 }
 0x102   :  { %v279_v7 = vmax.f32 %v266_v5, %v278_v6 }
 0x104   :  { %v280_v8 = vrot.slane %v279_v7, 2 }
 0x106   :  { %v281_v9 = vmax.f32 %v279_v7, %v280_v8  ;;  %v251_v10 = vpop.f32.mrb[0].mxu1 }
 0x107   :  { %v255_v11 = vmul.f32 0.5, %v251_v10  ;;  %v357_v12 = vpop.f32.mrb[1].mxu1 }
 0x108   :  { %v282_v13 = vrot.slane %v281_v9, 1 }
 0x109   :  { %v257_v14 = vsel %vm256_vm2, %v255_v11, -inf }
 0x10a   :  { %v283_v15 = vmax.f32 %v281_v9, %v282_v13  ;;  %258 = vmax.xlane.f32.xlu0 %v257_v14 }
 0x10c   :  { %v284_v16 = vsub.f32 %v111_v3, %v283_v15 }
 0x10e   :  { %v285_v17 = vmul.f32 1.442695, %v284_v16 }
 0x110   :  { %365 = vpow2.f32 %v285_v17 }
 0x11a   :  { %v366_v18 = vpop.eup %365 }
 0x11b   :  { %v287_v19 = vsel %vm256_vm2, %v366_v18, 0.0 }
 0x11c   :  { %v288_v20 = vrot.slane %v287_v19, 4 }
 0x11e   :  { %v289_v21 = vadd.f32 %v288_v20, %v287_v19 }
 0x120   :  { %v290_v22 = vrot.slane %v289_v21, 2 }
 0x122   :  { %v291_v23 = vadd.f32 %v290_v22, %v289_v21 }
 0x124   :  { %v292_v24 = vrot.slane %v291_v23, 1 }
 0x126   :  { %v293_v25 = vadd.f32 %v292_v24, %v291_v23 }
 0x128   :  { %367 = vlog2.f32 %v293_v25 }
 0x132   :  { %v368_v26 = vpop.eup %367 }
 0x133   :  { %v295_v27 = vmul.f32 0.6931472, %v368_v26 }
 0x135   :  { %v296_v28 = vadd.f32 %v295_v27, %v283_v15 }
 0x18d   :  { %v268_v29 = vpop.xlane.xlu0 %267 }
 0x18e   :  { %v269_v30 = vsub.f32 %v111_v3, %v268_v29 }
 0x190   :  { %v270_v31 = vmul.f32 1.442695, %v269_v30 }
 0x192   :  { %369 = vpow2.f32 %v270_v31 }
 0x197   :  { %v259_v32 = vpop.xlane.xlu0 %258 }
 0x198   :  { %v260_v33 = vsub.f32 %v255_v11, %v259_v32 }
 0x19a   :  { %v261_v34 = vmul.f32 1.442695, %v260_v33 }
 0x19c   :  { %v370_v35 = vpop.eup %369  ;;  %371 = vpow2.f32 %v261_v34 }
 0x19d   :  { %v272_v36 = vsel %vm256_vm2, %v370_v35, 0.0 }
 0x19e   :  { %273 = vadd.xlane.f32.xlu1 %v272_v36 }
 0x1a6   :  { %v372_v37 = vpop.eup %371 }
 0x1a7   :  { %v263_v38 = vsel %vm256_vm2, %v372_v37, 0.0 }
 0x1a8   :  { %264 = vadd.xlane.f32.xlu1 %v263_v38 }
 0x22b   :  { %v274_v39 = vpop.xlane.xlu1 %273 }
 0x22c   :  { %373 = vlog2.f32 %v274_v39 }
 0x235   :  { %v265_v48 = vpop.xlane.xlu1 %264 }
 0x236   :  { %v374_v40 = vpop.eup %373  ;;  %375 = vrcp.f32 %v265_v48 }
 0x237   :  { %v276_v41 = vmul.f32 0.6931472, %v374_v40 }
 0x239   :  { %v277_v42 = vadd.f32 %v276_v41, %v268_v29 }
 0x23b   :  { %v297_v44 = vadd.f32 %v296_v28, %v277_v42 }
 0x23d   :  { %v299_v45 = vsub.f32 %v297_v44, %v298_v43 }
 0x23f   :  { %v300_v46 = vmul.f32 %v372_v37, %v299_v45 }
 0x240   :  { %v376_v49 = vpop.eup %375 }
 0x241   :  { %v301_v47 = vsel %vm256_vm2, %v300_v46, 0.0 }
 0x242   :  { %302 = vadd.xlane.f32.xlu0 %v301_v47 }
 0x2cf   :  { %v303_v50 = vpop.xlane.xlu0 %302 }
 0x2d0   :  { %v305_v51 = vmul.f32 %v376_v49, %v303_v50 }
 0x2d2   :  { %v306_v52 = vrot.slane %v305_v51, 4 }
 0x2d4   :  { %v307_v53 = vadd.f32 %v306_v52, %v305_v51 }
 0x2d6   :  { %v308_v54 = vrot.slane %v307_v53, 2 }
 0x2d8   :  { %v309_v55 = vadd.f32 %v308_v54, %v307_v53 }
 0x2da   :  { %v310_v56 = vrot.slane %v309_v55, 1 }
 0x2dc   :  { %v311_v57 = vadd.f32 %v310_v56, %v309_v55 }
 0x2de   :  { %v312_v58 = vmul.f32 0.0625, %v311_v57 }
 0x2e0   :  { %314 = vst.msk [vmem:[#allocation7] sm:$0x1] %vm313_vm3, %v312_v58 }
 0x2e1   :  { %432 = shalt.err (!%p429_p6)
}
 0x2e2   :  { %s433_s9 = scalar_lea.hbm %s513_s2, 16 }
 0x2e3   :  { %p434_p7 = scmp.ne.s32.totalorder %s513_s2, %s433_s9  ;;  %p437_p8 = scmp.lt.u32.totalorder %s433_s9, %s513_s2 }
 0x2e5   :  { %p439_p9 = pnand %p437_p8, %p434_p7 }
 0x2e7   :  { %442 = shalt.err (!%p439_p9)
}
 0x2e8   :  { %324 = dma.vmem_to_hbm [thread:$0]  %s322_s4, 16, %s513_s2, [#allocation4]  }
 0x2e9   :  { %447 = dma.done.wait [#allocation4], 16  }
 0x2ea   :  { %448 = vsyncadd [#allocation4], 4294967280 }
 0x2eb   :  { %328 = vsyncpa [#allocation3], 1 }
 0x2ec   :  { %329 = vsyncpa [#allocation6], 1 }
 0x2ed   :  { %330 = vsyncpa [#allocation4], 1 }

</bundles_post_ra>
